<compile_context>
chip_gen: v5e
topology: v5e:2x2
jax: 0.10.0
libtpu: 0.0.40
codegen_flags: <defaults>
</compile_context>

<pallas_src>
import jax
import jax.numpy as jnp
from jax.experimental import pallas as pl
from jax.experimental.pallas import tpu as pltpu


def _round_up(x, m):
    return ((x + m - 1) // m) * m


def decoder_kernel(z_ref, w1_ref, b1_ref, w2_ref, b2_ref, p_ref):
    """One batch tile: p = sigmoid((tanh(z @ W1 + b1)) @ W2 + b2)."""
    # fc1 + tanh: MXU matmul with f32 accumulation; tanh on the EUP slot.
    h = jnp.tanh(
        jnp.dot(z_ref[...], w1_ref[...], preferred_element_type=jnp.float32)
        + b1_ref[...]
    )
    # fc2: cast h to the weight dtype so bf16 weights hit the native bf16 MXU
    # path on every generation (v5e included); accumulation stays f32.
    logits = (
        jnp.dot(h.astype(w2_ref.dtype), w2_ref[...],
                preferred_element_type=jnp.float32)
        + b2_ref[...]
    )
    # sigmoid(x) == 0.5 * tanh(0.5 * x) + 0.5 : a single EUP transcendental per
    # element instead of exp + divide.
    p = 0.5 * jnp.tanh(0.5 * logits) + 0.5
    # Output block's last dim is the UNPADDED data_dim (equals the full array
    # dim -> legal).  Padded columns of `logits` are dropped right here, so the
    # wrapper never has to slice/copy the output again.
    p_ref[...] = p[:, : p_ref.shape[-1]].astype(p_ref.dtype)


def prepare_decoder_params(w1, b1, w2, b2):
    """One-time parameter prep; call once and reuse across forward calls.

    Zero-pads hidden/data dims up to multiples of 128 so the kernel gets
    lane-dense MXU tiles.  Padding is exact: padded hidden columns give
    tanh(0) = 0 against zero-padded W2 rows, and padded data columns are never
    written to the output.

    w1 : (latent, hidden)   b1 : (1, hidden) or (hidden,)
    w2 : (hidden, data)     b2 : (1, data)   or (data,)
    """
    latent, hidden = w1.shape
    data_dim = w2.shape[1]
    hp = _round_up(hidden, 128)
    dp = _round_up(data_dim, 128)
    w1_p = jnp.zeros((latent, hp), w1.dtype).at[:, :hidden].set(w1)
    b1_p = jnp.zeros((1, hp), b1.dtype).at[:, :hidden].set(
        jnp.reshape(b1, (1, hidden)))
    w2_p = jnp.zeros((hp, dp), w2.dtype).at[:hidden, :data_dim].set(w2)
    b2_p = jnp.zeros((1, dp), b2.dtype).at[:, :data_dim].set(
        jnp.reshape(b2, (1, data_dim)))
    return {"w1": w1_p, "b1": b1_p, "w2": w2_p, "b2": b2_p,
            "latent": latent, "hidden": hidden, "data_dim": data_dim,
            "hp": hp, "dp": dp}


def decoder_forward(z, params, *, batch_tile=1024, out_dtype=None,
                    vmem_limit_bytes=None):
    """Forward pass of the Decoder.

    z      : (batch, latent)
    params : output of prepare_decoder_params (padded, VMEM-resident weights)
    Returns p : (batch, data_dim) in `out_dtype` (defaults to z.dtype, so a
    bf16 input gives a bf16 output and halves the HBM store traffic).
    """
    batch, latent = z.shape
    assert latent == params["latent"], "latent dim mismatch"
    hp, dp, data_dim = params["hp"], params["dp"], params["data_dim"]
    w1_p, b1_p = params["w1"], params["b1"]
    w2_p, b2_p = params["w2"], params["b2"]
    out_dtype = jnp.dtype(out_dtype if out_dtype is not None else z.dtype)

    # Batch tiling: sublane multiple safe for both f32 (8) and bf16 (16).  Cap
    # the tile so the batch grid has at least 2 steps whenever the batch allows
    # it -> both v7x TensorCores get work under "parallel" semantics.
    sub = 16
    bp0 = _round_up(batch, sub)
    half = _round_up(max(sub, -(-bp0 // 2)), sub)          # ceil(bp0/2) -> sub
    tb = max(sub, min(_round_up(batch_tile, sub), half))
    bp = _round_up(batch, tb)
    grid = (bp // tb,)

    # Skip the batch pad copy entirely when already tile-aligned.
    if bp == batch:
        z_p = z
    else:
        z_p = jnp.zeros((bp, latent), z.dtype).at[:batch, :].set(z)

    z_itm = jnp.dtype(z.dtype).itemsize
    w_itm = jnp.dtype(w1_p.dtype).itemsize
    o_itm = out_dtype.itemsize
    weight_bytes = ((latent * hp + hp) + (hp * dp + dp)) * w_itm

    if vmem_limit_bytes is None:
        # Double-buffered streamed z/out tiles + (double-buffered) resident
        # weights + f32 intermediates, with margin.  Clamped to be safe on
        # every generation (v5e scoped default 16 MiB; v7x 64 MiB physical).
        need = (2 * tb * latent * z_itm
                + 2 * tb * data_dim * o_itm
                + 2 * weight_bytes
                + 2 * tb * max(hp, dp) * 4
                + (4 << 20))
        vmem_limit_bytes = int(max(32 << 20, min(need, 64 << 20)))

    cost = pl.CostEstimate(
        flops=2 * bp * (latent * hp + hp * dp),
        transcendentals=bp * (hp + dp),
        bytes_accessed=(bp * latent * z_itm
                        + weight_bytes
                        + bp * data_dim * o_itm),
    )

    p = pl.pallas_call(
        decoder_kernel,
        out_shape=jax.ShapeDtypeStruct((bp, data_dim), out_dtype),
        grid=grid,
        in_specs=[
            pl.BlockSpec((tb, latent), lambda i: (i, 0)),   # z : streamed tile
            pl.BlockSpec((latent, hp), lambda i: (0, 0)),   # W1: VMEM-resident
            pl.BlockSpec((1, hp),      lambda i: (0, 0)),   # b1: VMEM-resident
            pl.BlockSpec((hp, dp),     lambda i: (0, 0)),   # W2: VMEM-resident
            pl.BlockSpec((1, dp),      lambda i: (0, 0)),   # b2: VMEM-resident
        ],
        out_specs=pl.BlockSpec((tb, data_dim), lambda i: (i, 0)),
        compiler_params=pltpu.CompilerParams(
            dimension_semantics=("parallel",),   # shard batch tiles across TCs
            vmem_limit_bytes=vmem_limit_bytes,
        ),
        cost_estimate=cost,
    )(z_p, w1_p, b1_p, w2_p, b2_p)

    return p if bp == batch else p[:batch]


def init_decoder_params(key, latent_dimension, hidden_units, data_dimension,
                        dtype=jnp.float32):
    """Deterministic synthetic init (PyTorch-style uniform fan-in bounds).

    bf16 weights/activations are recommended on all TPU generations (the MXU
    is bf16-native on v5e/v6e/v7x); accumulation stays f32 in the kernel.
    """
    k1, k2, k3, k4 = jax.random.split(key, 4)
    bound1 = 1.0 / jnp.sqrt(latent_dimension)
    bound2 = 1.0 / jnp.sqrt(hidden_units)
    # Stored as (in_features, out_features): transpose of nn.Linear.weight.
    w1 = jax.random.uniform(
        k1, (latent_dimension, hidden_units), jnp.float32, -bound1, bound1)
    b1 = jax.random.uniform(k2, (1, hidden_units), jnp.float32, -bound1, bound1)
    w2 = jax.random.uniform(
        k3, (hidden_units, data_dimension), jnp.float32, -bound2, bound2)
    b2 = jax.random.uniform(k4, (1, data_dimension), jnp.float32, -bound2, bound2)
    return (w1.astype(dtype), b1.astype(dtype),
            w2.astype(dtype), b2.astype(dtype))


if __name__ == "__main__":
    # Small shapes consistent with the module: latent=8, hidden=32, data=64.
    latent_dimension = 8
    hidden_units = 32
    data_dimension = 64

    key = jax.random.PRNGKey(0)
    kz, kp, kz2 = jax.random.split(key, 3)
    w1, b1, w2, b2 = init_decoder_params(
        kp, latent_dimension, hidden_units, data_dimension)

    # One-time padded-parameter prep (reused across forward calls).
    params_f32 = prepare_decoder_params(w1, b1, w2, b2)

    # --- f32, small batch: exact check against pure-JAX reference ---
    batch = 8
    z = jax.random.normal(kz, (batch, latent_dimension), dtype=jnp.float32)
    p_ref = jax.nn.sigmoid(jnp.tanh(z @ w1 + b1) @ w2 + b2)
    p = decoder_forward(z, params_f32)
    jax.block_until_ready(p)
    assert p.shape == (batch, data_dimension)
    assert jnp.allclose(p, p_ref, atol=1e-5), "f32 mismatch vs JAX reference"

    # --- f32, non-aligned batch: exercises multi-step grid + pad/slice path ---
    batch2 = 100
    z2 = jax.random.normal(kz2, (batch2, latent_dimension), dtype=jnp.float32)
    p2_ref = jax.nn.sigmoid(jnp.tanh(z2 @ w1 + b1) @ w2 + b2)
    p2 = decoder_forward(z2, params_f32, batch_tile=64)
    jax.block_until_ready(p2)
    assert p2.shape == (batch2, data_dimension)
    assert jnp.allclose(p2, p2_ref, atol=1e-5), "f32 tiled mismatch vs reference"

    # --- bf16 weights + activations (recommended on v5e/v6e/v7x): bf16 output,
    #     f32 MXU accumulation keeps it close to the f32 reference.  Note the
    #     activations (z) are quantized to bf16 too, not just the weights.  ---
    bf16 = jnp.bfloat16
    params_bf16 = prepare_decoder_params(
        w1.astype(bf16), b1.astype(bf16), w2.astype(bf16), b2.astype(bf16))
    p_bf16 = decoder_forward(z.astype(bf16), params_bf16)
    jax.block_until_ready(p_bf16)
    assert p_bf16.shape == (batch, data_dimension)
    assert p_bf16.dtype == bf16
    assert jnp.allclose(p_bf16.astype(jnp.float32), p_ref, atol=5e-2), \
        "bf16 mismatch vs JAX reference"

    print("KERNEL_OK")
</pallas_src>

<mosaic_0001>
module attributes {stable_mosaic.version = 11 : i64} {
  func.func @decoder_kernel(%arg0: i32, %arg1: memref<16x8xf32, #tpu.memory_space<vmem>>, %arg2: memref<8x128xf32, #tpu.memory_space<vmem>>, %arg3: memref<1x128xf32, #tpu.memory_space<vmem>>, %arg4: memref<128x128xf32, #tpu.memory_space<vmem>>, %arg5: memref<1x128xf32, #tpu.memory_space<vmem>>, %arg6: memref<16x64xf32, #tpu.memory_space<vmem>>) attributes {dimension_semantics = [#tpu.dimension_semantics<parallel>], iteration_bounds = array<i64: 1>, scalar_prefetch = 0 : i64, scratch_operands = 0 : i64, tpu.core_type = #tpu.core_type<tc>, window_params = [{transform_indices = @transform_0, window_bounds = array<i64: 16, 8>}, {pipeline_mode = #tpu.pipeline_mode<synchronous>, transform_indices = @transform_1, window_bounds = array<i64: 8, 128>}, {pipeline_mode = #tpu.pipeline_mode<synchronous>, transform_indices = @transform_2, window_bounds = array<i64: 1, 128>}, {pipeline_mode = #tpu.pipeline_mode<synchronous>, transform_indices = @transform_3, window_bounds = array<i64: 128, 128>}, {pipeline_mode = #tpu.pipeline_mode<synchronous>, transform_indices = @transform_4, window_bounds = array<i64: 1, 128>}, {transform_indices = @transform_5, window_bounds = array<i64: 16, 64>}]} {
    %c0 = arith.constant 0 : index
    %c0_0 = arith.constant 0 : index
    %0 = vector.load %arg1[%c0, %c0_0] : memref<16x8xf32, #tpu.memory_space<vmem>>, vector<16x8xf32>
    %c0_1 = arith.constant 0 : index
    %c0_2 = arith.constant 0 : index
    %1 = vector.load %arg2[%c0_1, %c0_2] : memref<8x128xf32, #tpu.memory_space<vmem>>, vector<8x128xf32>
    %cst = arith.constant dense<0.000000e+00> : vector<16x128xf32>
    %2 = tpu.matmul %0, %1, %cst {dimension_numbers = #tpu.dot_dimension_numbers<[1], [0], [0], [1], [0, 0, 1, 1], [], []>} : vector<16x8xf32>, vector<8x128xf32>, vector<16x128xf32> -> vector<16x128xf32>
    %c0_3 = arith.constant 0 : index
    %c0_4 = arith.constant 0 : index
    %3 = vector.load %arg3[%c0_3, %c0_4] : memref<1x128xf32, #tpu.memory_space<vmem>>, vector<1x128xf32>
    %4 = vector.broadcast %3 : vector<1x128xf32> to vector<16x128xf32>
    %5 = arith.addf %2, %4 : vector<16x128xf32>
    %6 = math.tanh %5 : vector<16x128xf32>
    %c0_5 = arith.constant 0 : index
    %c0_6 = arith.constant 0 : index
    %7 = vector.load %arg4[%c0_5, %c0_6] : memref<128x128xf32, #tpu.memory_space<vmem>>, vector<128x128xf32>
    %cst_7 = arith.constant dense<0.000000e+00> : vector<16x128xf32>
    %8 = tpu.matmul %6, %7, %cst_7 {dimension_numbers = #tpu.dot_dimension_numbers<[1], [0], [0], [1], [0, 0, 1, 1], [], []>} : vector<16x128xf32>, vector<128x128xf32>, vector<16x128xf32> -> vector<16x128xf32>
    %c0_8 = arith.constant 0 : index
    %c0_9 = arith.constant 0 : index
    %9 = vector.load %arg5[%c0_8, %c0_9] : memref<1x128xf32, #tpu.memory_space<vmem>>, vector<1x128xf32>
    %10 = vector.broadcast %9 : vector<1x128xf32> to vector<16x128xf32>
    %11 = arith.addf %8, %10 : vector<16x128xf32>
    %cst_10 = arith.constant 5.000000e-01 : f32
    %12 = vector.broadcast %cst_10 : f32 to vector<16x128xf32>
    %13 = arith.mulf %12, %11 : vector<16x128xf32>
    %14 = math.tanh %13 : vector<16x128xf32>
    %cst_11 = arith.constant 5.000000e-01 : f32
    %15 = vector.broadcast %cst_11 : f32 to vector<16x128xf32>
    %16 = arith.mulf %15, %14 : vector<16x128xf32>
    %cst_12 = arith.constant 5.000000e-01 : f32
    %17 = vector.broadcast %cst_12 : f32 to vector<16x128xf32>
    %18 = arith.addf %16, %17 : vector<16x128xf32>
    %19 = vector.extract_strided_slice %18 {offsets = [0, 0], sizes = [16, 64], strides = [1, 1]} : vector<16x128xf32> to vector<16x64xf32>
    %c0_13 = arith.constant 0 : index
    %c0_14 = arith.constant 0 : index
    %20 = vector.load %arg6[%c0_13, %c0_14] : memref<16x64xf32, #tpu.memory_space<vmem>>, vector<16x64xf32>
    tpu.vector_store %arg6[%c0_13, %c0_14], %19 {strides = array<i32>} : memref<16x64xf32, #tpu.memory_space<vmem>>, vector<16x64xf32>,
    return
  }
  func.func @transform_0(%arg0: i32) -> (i32, i32) {
    %c0_i32 = arith.constant 0 : i32
    %c0_i32_0 = arith.constant 0 : i32
    return %arg0, %c0_i32 : i32, i32
  }
  func.func @transform_1(%arg0: i32) -> (i32, i32) {
    %c0_i32 = arith.constant 0 : i32
    %c0_i32_0 = arith.constant 0 : i32
    %c0_i32_1 = arith.constant 0 : i32
    return %c0_i32, %c0_i32_0 : i32, i32
  }
  func.func @transform_2(%arg0: i32) -> (i32, i32) {
    %c0_i32 = arith.constant 0 : i32
    %c0_i32_0 = arith.constant 0 : i32
    %c0_i32_1 = arith.constant 0 : i32
    return %c0_i32, %c0_i32_0 : i32, i32
  }
  func.func @transform_3(%arg0: i32) -> (i32, i32) {
    %c0_i32 = arith.constant 0 : i32
    %c0_i32_0 = arith.constant 0 : i32
    %c0_i32_1 = arith.constant 0 : i32
    return %c0_i32, %c0_i32_0 : i32, i32
  }
  func.func @transform_4(%arg0: i32) -> (i32, i32) {
    %c0_i32 = arith.constant 0 : i32
    %c0_i32_0 = arith.constant 0 : i32
    %c0_i32_1 = arith.constant 0 : i32
    return %c0_i32, %c0_i32_0 : i32, i32
  }
  func.func @transform_5(%arg0: i32) -> (i32, i32) {
    %c0_i32 = arith.constant 0 : i32
    %c0_i32_0 = arith.constant 0 : i32
    return %arg0, %c0_i32 : i32, i32
  }
}

</mosaic_0001>

<bundles_post_ra>
// kernel: tpu_custom_call.1
= control target key start
LH: loop header
LB: loop body
LE: loop exit
PB: predicated region body
PF: predicated region fallthrough
CT: control target
= control target key end

     0   :  { %10 = vsyncpa [#allocation3], 0  ;;  %s296_s0 = inlined_call_operand.vmem [shape: f32[16,8], index: 0, kind: input, shape index: {}]   ;;  %s297_s1 = inlined_call_operand.vmem [shape: f32[8,128], index: 1, kind: input, shape index: {}]   ;;  %s298_s2 = inlined_call_operand.vmem [shape: f32[1,128], index: 2, kind: input, shape index: {}]   ;;  %s299_s3 = inlined_call_operand.hbm [shape: f32[128,128], index: 3, kind: input, shape index: {}]   ;;  %s300_s4 = inlined_call_operand.vmem [shape: f32[1,128], index: 4, kind: input, shape index: {}]   ;;  %s301_s5 = inlined_call_operand.hbm [shape: f32[16,64], index: 5, kind: output, shape index: {}]  }
   0x1   :  { %11 = vsyncpa [#allocation4], 0  ;;  %s22_s20 = sshll.u32 %s299_s3, 4  ;;  %s233_s21 = smov [#allocation2]   ;;  %s23_s20 = int_to_ptr.hbm [resolvable:$true] %s22_s20 }
   0x2   :  { %s24_s22 = sshll.u32 %s233_s21, 4  ;;  %s234_s23 = smov 128   ;;  %s25_s22 = int_to_ptr.vmem [resolvable:$true] %s24_s22 }
   0x3   :  { %s235_s24 = smov 8  }
   0x4   :  { %30 = dma.hbm_to_vmem [thread:$0]  %s23_s20, 2048, %s25_s22, [#allocation3], %s234_s23, %s234_s23, %s235_s24  }
   0x5   :  { %229 = dma.done.wait [#allocation3], 2048  }
   0x6   :  { %230 = vsyncadd [#allocation3], 4294965248  ;;  %vm44_vm0 = vcmask 64512   ;;  %v39_v0 = vld [vmem:[%s297_s1] sm:$0xff]  ;;  %v91_v2 = vld [vmem:[#allocation2 + $0x78] sm:$0xff]  ;;  %vm127_vm1 = vcmask 523264  }
   0x7   :  { %v37_v1 = vld [vmem:[%s296_s0] sm:$0xff]  ;;  %66 = vmatpush.msra.mxu0 %v39_v0  ;;  %v90_v3 = vld [vmem:[#allocation2 + $0x70] sm:$0xff]  ;;  %96 = vmatpush.msra.mxu1 %v91_v2  ;;  %v89_v4 = vld [vmem:[#allocation2 + $0x68] sm:$0xff] }
   0x8   :  { %149 = vmatmul.msk.f32.vlgmr.msra.gmra.mxu0 %vm44_vm0, %v37_v1  ;;  %151 = vmatpush.msra.mxu2 %v91_v2  ;;  %v88_v5 = vld [vmem:[#allocation2 + $0x60] sm:$0xff]  ;;  %v38_v6 = vld [vmem:[%s296_s0 + $0x8] sm:$0xff]  ;;  %v87_v7 = vld [vmem:[#allocation2 + $0x58] sm:$0xff] }
   0x9   :  { %97 = vmatpush.msra.mxu1 %v90_v3  ;;  %v86_v8 = vld [vmem:[#allocation2 + $0x50] sm:$0xff]  ;;  %v85_v9 = vld [vmem:[#allocation2 + $0x48] sm:$0xff]  ;;  %v84_v10 = vld [vmem:[#allocation2 + $0x40] sm:$0xff] }
   0xa   :  { %152 = vmatpush.msra.mxu2 %v90_v3  ;;  %v83_v11 = vld [vmem:[#allocation2 + $0x38] sm:$0xff]  ;;  %v82_v12 = vld [vmem:[#allocation2 + $0x30] sm:$0xff]  ;;  %v81_v13 = vld [vmem:[#allocation2 + $0x28] sm:$0xff] }
   0xb   :  { %98 = vmatpush.msra.mxu1 %v89_v4  ;;  %v80_v14 = vld [vmem:[#allocation2 + $0x20] sm:$0xff]  ;;  %v79_v15 = vld [vmem:[#allocation2 + $0x18] sm:$0xff]  ;;  %v78_v16 = vld [vmem:[#allocation2 + $0x10] sm:$0xff] }
   0xc   :  { %153 = vmatpush.msra.mxu2 %v89_v4  ;;  %v77_v17 = vld [vmem:[#allocation2 + $0x8] sm:$0xff]  ;;  %v76_v18 = vld [vmem:[#allocation2] sm:$0xff] }
   0xd   :  { %99 = vmatpush.msra.mxu1 %v88_v5  ;;  %v171_v19 = vld [vmem:[%s298_s2] ss:$0 sm:$0xff]  ;;  %s236_s2 = smov [#allocation5]  }
   0xe   :  { %154 = vmatpush.msra.mxu2 %v88_v5  ;;  %v172_v26 = vld [vmem:[%s300_s4] ss:$0 sm:$0xff]  ;;  %s134_s7 = sshll.u32 %s236_s2, 4  ;;  %s136_s4 = sshll.u32 %s301_s5, 4  ;;  %s135_s7 = int_to_ptr.vmem [resolvable:$true] %s134_s7  ;;  %s137_s4 = int_to_ptr.hbm [resolvable:$true] %s136_s4 }
   0xf   :  { %100 = vmatpush.msra.mxu1 %v87_v7 }
  0x10   :  { %150 = vmatmul.msk.f32.gmra.mxu0 %vm44_vm0, %v38_v6  ;;  %155 = vmatpush.msra.mxu2 %v87_v7 }
  0x11   :  { %101 = vmatpush.msra.mxu1 %v86_v8 }
  0x12   :  { %156 = vmatpush.msra.mxu2 %v86_v8 }
  0x13   :  { %102 = vmatpush.msra.mxu1 %v85_v9 }
  0x14   :  { %157 = vmatpush.msra.mxu2 %v85_v9 }
  0x15   :  { %103 = vmatpush.msra.mxu1 %v84_v10 }
  0x16   :  { %158 = vmatpush.msra.mxu2 %v84_v10 }
  0x17   :  { %104 = vmatpush.msra.mxu1 %v83_v11 }
  0x18   :  { %159 = vmatpush.msra.mxu2 %v83_v11 }
  0x19   :  { %105 = vmatpush.msra.mxu1 %v82_v12 }
  0x1a   :  { %160 = vmatpush.msra.mxu2 %v82_v12 }
  0x1b   :  { %106 = vmatpush.msra.mxu1 %v81_v13 }
  0x1c   :  { %161 = vmatpush.msra.mxu2 %v81_v13 }
  0x1d   :  { %107 = vmatpush.msra.mxu1 %v80_v14 }
  0x1e   :  { %162 = vmatpush.msra.mxu2 %v80_v14 }
  0x1f   :  { %108 = vmatpush.msra.mxu1 %v79_v15 }
  0x20   :  { %163 = vmatpush.msra.mxu2 %v79_v15 }
  0x21   :  { %109 = vmatpush.msra.mxu1 %v78_v16 }
  0x22   :  { %164 = vmatpush.msra.mxu2 %v78_v16 }
  0x23   :  { %110 = vmatpush.msra.mxu1 %v77_v17 }
  0x24   :  { %165 = vmatpush.msra.mxu2 %v77_v17 }
  0x25   :  { %111 = vmatpush.msra.mxu1 %v76_v18 }
  0x26   :  { %166 = vmatpush.msra.mxu2 %v76_v18 }
  0x85   :  { %v68_v20 = vpop.f32.mrf.mxu0 }
  0x86   :  { %v69_v21 = vadd.f32 %v171_v19, %v68_v20 }
  0x88   :  { %173 = vtanh.f32 %v69_v21 }
  0x8d   :  { %v71_v22 = vpop.f32.mrf.mxu0 }
  0x8e   :  { %v174_v23 = vpop.eup %173  ;;  %v72_v24 = vadd.f32 %v171_v19, %v71_v22 }
  0x8f   :  { %112 = vmatmul.f32.vlgmr.msra.gmra.mxu1 %v174_v23 }
  0x90   :  { %175 = vtanh.f32 %v72_v24 }
  0x96   :  { %v176_v25 = vpop.eup %175 }
  0x97   :  { %115 = vmatmul.f32.vlgmr.msra.gmra.mxu2 %v176_v25 }
 0x10c   :  { %v113_v27 = vpop.f32.mrf.mxu1 }
 0x10d   :  { %v114_v28 = vadd.f32 %v172_v26, %v113_v27 }
 0x10f   :  { %v119_v29 = vmul.f32 0.5, %v114_v28 }
 0x111   :  { %177 = vtanh.f32 %v119_v29 }
 0x117   :  { %v178_v30 = vpop.eup %177 }
 0x118   :  { %v123_v31 = vmul.f32 0.5, %v178_v30 }
 0x11a   :  { %v125_v32 = vadd.f32 0.5, %v123_v31  ;;  %v116_v33 = vpop.f32.mrf.mxu2 }
 0x11b   :  { %v117_v34 = vadd.f32 %v172_v26, %v116_v33 }
 0x11c   :  { %128 = vst.msk [vmem:[#allocation5] sm:$0xff] %vm127_vm1, %v125_v32 }
 0x11d   :  { %v120_v35 = vmul.f32 0.5, %v117_v34 }
 0x11f   :  { %179 = vtanh.f32 %v120_v35 }
 0x125   :  { %v180_v36 = vpop.eup %179 }
 0x126   :  { %v124_v37 = vmul.f32 0.5, %v180_v36 }
 0x128   :  { %v126_v38 = vadd.f32 0.5, %v124_v37 }
 0x12a   :  { %129 = vst.msk [vmem:[#allocation5 + $0x8] sm:$0xff] %vm127_vm1, %v126_v38 }
 0x12b   :  { %142 = dma.vmem_to_hbm [thread:$0]  %s135_s7, 256, %s137_s4, [#allocation4], %s234_s23, %s234_s23, %s235_s24  }
 0x12c   :  { %231 = dma.done.wait [#allocation4], 256  }
 0x12d   :  { %232 = vsyncadd [#allocation4], 4294967040 }
 0x12e   :  { %147 = vsyncpa [#allocation3], 1 }
 0x12f   :  { %148 = vsyncpa [#allocation4], 1 }

</bundles_post_ra>
